<compile_context>
chip_gen: v5e
topology: v5e:2x2
jax: 0.10.0
libtpu: 0.0.40
codegen_flags: <defaults>
</compile_context>

<pallas_src>
import jax
import jax.numpy as jnp
from jax.experimental import pallas as pl
from jax.experimental.pallas import tpu as pltpu


LANE = 128          # TPU lane width: tile last dim kept a multiple of this (or == L)
MAX_TILE_L = 4096   # upper bound on lanes per grid step
MAX_NB = 8          # max batch rows folded into one block
SMALL_STEP_BYTES = 512 * 1024   # fold batch if per-step output tile is below this


def _vmem_capacity_bytes():
    """Physical VMEM of the current generation; conservative v7x fallback."""
    try:
        return int(pltpu.get_tpu_info().vmem_capacity_bytes)
    except Exception:
        return 64 * 1024 * 1024  # v7x worst case


# ---------------------------------------------------------------------------
# Pallas kernels. Refs are 3-D: x (nb, Cin, tL), w (H, Cin), b (H, 1),
# out (nb, c_out, tL).  The nb loop is a small static Python loop so each
# matmul is a plain (H, Cin) @ (Cin, tL) MXU op with no in-kernel transposes.
# ---------------------------------------------------------------------------
def _conv1x1_with_label_kernel(xd_ref, xl_ref, wt_ref, b_ref, o_ref):
    """out[:, :H]  = W @ x_label + b   (label half, matches torch.cat order)
       out[:, H:]  = W @ x_data  + b   (data half)"""
    wt = wt_ref[...]
    h = wt.shape[0]
    tl = o_ref.shape[-1]
    # Hoist the bias lane-broadcast once; reused for both halves & all nb rows.
    bb = jnp.broadcast_to(b_ref[...], (h, tl))
    nb = xd_ref.shape[0]
    for i in range(nb):  # static unroll (nb <= MAX_NB)
        yl = jnp.dot(wt, xl_ref[i], preferred_element_type=jnp.float32)
        yd = jnp.dot(wt, xd_ref[i], preferred_element_type=jnp.float32)
        # NOTE: if H % 8 != 0 the second-half store is sublane-misaligned; with
        # typical hidden sizes (multiples of 16) both halves are dense stores.
        o_ref[i, :h, :] = (yl + bb).astype(o_ref.dtype)
        o_ref[i, h:, :] = (yd + bb).astype(o_ref.dtype)


def _conv1x1_kernel(xd_ref, wt_ref, b_ref, o_ref):
    """with_label=False path: out = W @ x_data + b."""
    wt = wt_ref[...]
    h = wt.shape[0]
    tl = o_ref.shape[-1]
    bb = jnp.broadcast_to(b_ref[...], (h, tl))
    nb = xd_ref.shape[0]
    for i in range(nb):
        y = jnp.dot(wt, xd_ref[i], preferred_element_type=jnp.float32)
        o_ref[i, :, :] = (y + bb).astype(o_ref.dtype)


# ---------------------------------------------------------------------------
# Wrapper module
# ---------------------------------------------------------------------------
class ConvEncoderPallas:
    """JAX/Pallas port of the PyTorch ConvEncoder.

    As in the PyTorch forward(), only `conv_data` is ever used in forward;
    `conv_label` parameters exist but are dead (kept for parity).
    """

    def __init__(self, input_size, hidden_size, with_label, num_layers, dropout, key):
        if with_label:
            hidden_size = int(hidden_size / 2)
        hidden_size = int(hidden_size)
        self.with_label = with_label
        self.input_size = input_size
        self.hidden_size = hidden_size

        # PyTorch Conv1d default init: U(-1/sqrt(fan_in), 1/sqrt(fan_in)), fan_in = Cin*1
        k0, k1, k2, k3 = jax.random.split(key, 4)
        bound = 1.0 / (input_size ** 0.5)
        # conv weight stored in native (out_channels, in_channels) orientation
        self.w_data = jax.random.uniform(
            k0, (hidden_size, input_size), jnp.float32, -bound, bound)
        self.b_data = jax.random.uniform(
            k1, (hidden_size, 1), jnp.float32, -bound, bound)
        # conv_label: present in __init__, unused in forward (parity with PyTorch)
        self.w_label = jax.random.uniform(
            k2, (hidden_size, input_size), jnp.float32, -bound, bound)
        self.b_label = jax.random.uniform(
            k3, (hidden_size, 1), jnp.float32, -bound, bound)

    # -- tiling policy -----------------------------------------------------
    def _plan(self, N, C, L, c_out, n_inputs, out_itemsize, in_itemsize):
        vmem_cap = _vmem_capacity_bytes()
        # Budget ~1/3 of physical VMEM for the (double-buffered) tiles; the
        # rest is headroom for weights, semaphores and compiler scratch.
        budget = vmem_cap // 3
        bytes_per_lane = out_itemsize * c_out + in_itemsize * C * n_inputs
        tile_cap = budget // (2 * bytes_per_lane)            # double-buffered
        tile_cap = max(LANE, min(MAX_TILE_L, (tile_cap // LANE) * LANE))

        if L <= tile_cap:
            tile_l = L                       # single full-extent tile (always legal)
        else:
            tile_l = tile_cap                # multiple of 128; ragged tail is masked

        # v7x megacore: avoid a 1-step grid when we could split L instead.
        if N == 1 and L <= tile_l and L >= 2 * LANE:
            tile_l = max(LANE, ((pl.cdiv(L, 2) + LANE - 1) // LANE) * LANE)

        l_tiles = pl.cdiv(L, tile_l)

        # Fold batch rows when the per-step output tile is tiny.
        nb = 1
        per_step_out = c_out * tile_l * out_itemsize
        if N > 1 and per_step_out < SMALL_STEP_BYTES:
            nb = min(N, MAX_NB, max(1, SMALL_STEP_BYTES // max(1, per_step_out)))
            if l_tiles == 1:                 # keep >= 2 grid steps for megacore
                nb = min(nb, max(1, N // 2))

        vmem_limit = min(int(vmem_cap * 0.7),
                         max(32 * 1024 * 1024,
                             4 * nb * tile_l * bytes_per_lane))
        return tile_l, nb, vmem_limit

    def __call__(self, encoder_data, encoder_label, out_dtype=None):
        # inputs: NCL (batch, input_size, length), like PyTorch Conv1d
        N, C, L = encoder_data.shape
        assert C == self.input_size
        H = self.hidden_size
        if out_dtype is None:
            # bf16 here would ~halve the dominant HBM stream if numerics allow.
            out_dtype = jnp.promote_types(encoder_data.dtype, self.w_data.dtype)
        out_itemsize = jnp.dtype(out_dtype).itemsize
        in_itemsize = jnp.dtype(encoder_data.dtype).itemsize

        n_inputs = 2 if self.with_label else 1
        c_out = (2 * H) if self.with_label else H

        tile_l, nb, vmem_limit = self._plan(
            N, C, L, c_out, n_inputs, out_itemsize, in_itemsize)

        grid = (pl.cdiv(N, nb), pl.cdiv(L, tile_l))
        x_spec = pl.BlockSpec((nb, C, tile_l), lambda n, l: (n, 0, l))
        w_spec = pl.BlockSpec((H, C), lambda n, l: (0, 0))
        b_spec = pl.BlockSpec((H, 1), lambda n, l: (0, 0))
        o_spec = pl.BlockSpec((nb, c_out, tile_l), lambda n, l: (n, 0, l))
        cparams = pltpu.CompilerParams(
            dimension_semantics=("parallel", "parallel"),
            vmem_limit_bytes=vmem_limit,
        )
        cost = pl.CostEstimate(
            flops=2 * n_inputs * N * L * C * H,
            transcendentals=0,
            bytes_accessed=(in_itemsize * (n_inputs * N * C * L + C * H + H)
                            + out_itemsize * N * c_out * L),
        )

        if self.with_label:
            out = pl.pallas_call(
                _conv1x1_with_label_kernel,
                out_shape=jax.ShapeDtypeStruct((N, c_out, L), out_dtype),
                grid=grid,
                in_specs=[x_spec, x_spec, w_spec, b_spec],
                out_specs=o_spec,
                compiler_params=cparams,
                cost_estimate=cost,
            )(encoder_data, encoder_label, self.w_data, self.b_data)
        else:
            out = pl.pallas_call(
                _conv1x1_kernel,
                out_shape=jax.ShapeDtypeStruct((N, c_out, L), out_dtype),
                grid=grid,
                in_specs=[x_spec, w_spec, b_spec],
                out_specs=o_spec,
                compiler_params=cparams,
                cost_estimate=cost,
            )(encoder_data, self.w_data, self.b_data)
        return out


# ---------------------------------------------------------------------------
# Demo / correctness check
# ---------------------------------------------------------------------------
if __name__ == "__main__":
    key = jax.random.PRNGKey(0)
    k_param, k_param2, k_data, k_label = jax.random.split(key, 4)

    batch, input_size, seq_len, hidden_size = 2, 4, 8, 32

    encoder_data = jax.random.normal(k_data, (batch, input_size, seq_len), jnp.float32)
    encoder_label = jax.random.normal(k_label, (batch, input_size, seq_len), jnp.float32)

    def ref_conv(x, w, b):  # x: (N,C,L), w: (H,C), b: (H,1) -> (N,H,L)
        return jnp.einsum("hc,ncl->nhl", w, x) + b[None, :, :]

    # --- with_label=True path (torch.cat((label_out, data_out), dim=1)) ---
    enc = ConvEncoderPallas(input_size, hidden_size, True, 1, 0.0, k_param)
    out = jax.block_until_ready(enc(encoder_data, encoder_label))
    ref = jnp.concatenate(
        [ref_conv(encoder_label, enc.w_data, enc.b_data),
         ref_conv(encoder_data, enc.w_data, enc.b_data)], axis=1)
    assert out.shape == (batch, hidden_size, seq_len), out.shape
    assert jnp.allclose(out, ref, atol=1e-5, rtol=1e-5), "with_label mismatch vs reference"

    # --- with_label=False path ---
    enc2 = ConvEncoderPallas(input_size, hidden_size, False, 1, 0.0, k_param2)
    out2 = jax.block_until_ready(enc2(encoder_data, encoder_label))
    ref2 = ref_conv(encoder_data, enc2.w_data, enc2.b_data)
    assert out2.shape == (batch, hidden_size, seq_len), out2.shape
    assert jnp.allclose(out2, ref2, atol=1e-5, rtol=1e-5), "no-label mismatch vs reference"

    print("KERNEL_OK")
</pallas_src>

<mosaic_0001>
module attributes {stable_mosaic.version = 11 : i64} {
  func.func @_conv1x1_with_label_kernel(%arg0: i32, %arg1: i32, %arg2: memref<1x4x8xf32, #tpu.memory_space<vmem>>, %arg3: memref<1x4x8xf32, #tpu.memory_space<vmem>>, %arg4: memref<16x4xf32, #tpu.memory_space<vmem>>, %arg5: memref<16x1xf32, #tpu.memory_space<vmem>>, %arg6: memref<1x32x8xf32, #tpu.memory_space<vmem>>) attributes {dimension_semantics = [#tpu.dimension_semantics<parallel>, #tpu.dimension_semantics<parallel>], iteration_bounds = array<i64: 2, 1>, scalar_prefetch = 0 : i64, scratch_operands = 0 : i64, tpu.core_type = #tpu.core_type<tc>, window_params = [{transform_indices = @transform_0, window_bounds = array<i64: 1, 4, 8>}, {transform_indices = @transform_1, window_bounds = array<i64: 1, 4, 8>}, {pipeline_mode = #tpu.pipeline_mode<synchronous>, transform_indices = @transform_2, window_bounds = array<i64: 16, 4>}, {pipeline_mode = #tpu.pipeline_mode<synchronous>, transform_indices = @transform_3, window_bounds = array<i64: 16, 1>}, {transform_indices = @transform_4, window_bounds = array<i64: 1, 32, 8>}]} {
    %c0 = arith.constant 0 : index
    %c0_0 = arith.constant 0 : index
    %0 = vector.load %arg4[%c0, %c0_0] : memref<16x4xf32, #tpu.memory_space<vmem>>, vector<16x4xf32>
    %c0_1 = arith.constant 0 : index
    %c0_2 = arith.constant 0 : index
    %1 = vector.load %arg5[%c0_1, %c0_2] : memref<16x1xf32, #tpu.memory_space<vmem>>, vector<16x1xf32>
    %2 = vector.shape_cast %1 : vector<16x1xf32> to vector<16x1xf32>
    %3 = vector.broadcast %2 : vector<16x1xf32> to vector<16x8xf32>
    %c0_3 = arith.constant 0 : index
    %c0_4 = arith.constant 0 : index
    %c0_5 = arith.constant 0 : index
    %4 = vector.load %arg3[%c0_3, %c0_4, %c0_5] : memref<1x4x8xf32, #tpu.memory_space<vmem>>, vector<1x4x8xf32>
    %5 = vector.shape_cast %4 : vector<1x4x8xf32> to vector<4x8xf32>
    %cst = arith.constant dense<0.000000e+00> : vector<16x8xf32>
    %6 = tpu.matmul %0, %5, %cst {dimension_numbers = #tpu.dot_dimension_numbers<[1], [0], [0], [1], [0, 0, 1, 1], [], []>} : vector<16x4xf32>, vector<4x8xf32>, vector<16x8xf32> -> vector<16x8xf32>
    %c0_6 = arith.constant 0 : index
    %c0_7 = arith.constant 0 : index
    %c0_8 = arith.constant 0 : index
    %7 = vector.load %arg2[%c0_6, %c0_7, %c0_8] : memref<1x4x8xf32, #tpu.memory_space<vmem>>, vector<1x4x8xf32>
    %8 = vector.shape_cast %7 : vector<1x4x8xf32> to vector<4x8xf32>
    %cst_9 = arith.constant dense<0.000000e+00> : vector<16x8xf32>
    %9 = tpu.matmul %0, %8, %cst_9 {dimension_numbers = #tpu.dot_dimension_numbers<[1], [0], [0], [1], [0, 0, 1, 1], [], []>} : vector<16x4xf32>, vector<4x8xf32>, vector<16x8xf32> -> vector<16x8xf32>
    %10 = arith.addf %6, %3 : vector<16x8xf32>
    %c0_10 = arith.constant 0 : index
    %c0_11 = arith.constant 0 : index
    %c0_12 = arith.constant 0 : index
    %11 = vector.load %arg6[%c0_10, %c0_11, %c0_12] : memref<1x32x8xf32, #tpu.memory_space<vmem>>, vector<1x16x8xf32>
    %12 = vector.shape_cast %11 : vector<1x16x8xf32> to vector<16x8xf32>
    %13 = vector.shape_cast %10 : vector<16x8xf32> to vector<1x16x8xf32>
    tpu.vector_store %arg6[%c0_10, %c0_11, %c0_12], %13 {strides = array<i32>} : memref<1x32x8xf32, #tpu.memory_space<vmem>>, vector<1x16x8xf32>,
    %14 = arith.addf %9, %3 : vector<16x8xf32>
    %c0_13 = arith.constant 0 : index
    %c16 = arith.constant 16 : index
    %c0_14 = arith.constant 0 : index
    %15 = vector.load %arg6[%c0_13, %c16, %c0_14] : memref<1x32x8xf32, #tpu.memory_space<vmem>>, vector<1x16x8xf32>
    %16 = vector.shape_cast %15 : vector<1x16x8xf32> to vector<16x8xf32>
    %17 = vector.shape_cast %14 : vector<16x8xf32> to vector<1x16x8xf32>
    tpu.vector_store %arg6[%c0_13, %c16, %c0_14], %17 {strides = array<i32>} : memref<1x32x8xf32, #tpu.memory_space<vmem>>, vector<1x16x8xf32>,
    return
  }
  func.func @transform_0(%arg0: i32, %arg1: i32) -> (i32, i32, i32) {
    %c0_i32 = arith.constant 0 : i32
    %c0_i32_0 = arith.constant 0 : i32
    return %arg0, %c0_i32, %arg1 : i32, i32, i32
  }
  func.func @transform_1(%arg0: i32, %arg1: i32) -> (i32, i32, i32) {
    %c0_i32 = arith.constant 0 : i32
    %c0_i32_0 = arith.constant 0 : i32
    return %arg0, %c0_i32, %arg1 : i32, i32, i32
  }
  func.func @transform_2(%arg0: i32, %arg1: i32) -> (i32, i32) {
    %c0_i32 = arith.constant 0 : i32
    %c0_i32_0 = arith.constant 0 : i32
    %c0_i32_1 = arith.constant 0 : i32
    return %c0_i32, %c0_i32_0 : i32, i32
  }
  func.func @transform_3(%arg0: i32, %arg1: i32) -> (i32, i32) {
    %c0_i32 = arith.constant 0 : i32
    %c0_i32_0 = arith.constant 0 : i32
    %c0_i32_1 = arith.constant 0 : i32
    return %c0_i32, %c0_i32_0 : i32, i32
  }
  func.func @transform_4(%arg0: i32, %arg1: i32) -> (i32, i32, i32) {
    %c0_i32 = arith.constant 0 : i32
    %c0_i32_0 = arith.constant 0 : i32
    return %arg0, %c0_i32, %arg1 : i32, i32, i32
  }
}

</mosaic_0001>

<bundles_post_ra>
// kernel: tpu_custom_call.1
= control target key start
LH: loop header
LB: loop body
LE: loop exit
PB: predicated region body
PF: predicated region fallthrough
CT: control target
= control target key end

     0   :  { %s526_s15 = smov 0   ;;  %s528_s16 = smov 0   ;;  %s574_s0 = inlined_call_operand.vmem [shape: f32[2,4,8], index: 0, kind: input, shape index: {}]   ;;  %s575_s1 = inlined_call_operand.vmem [shape: f32[2,4,8], index: 1, kind: input, shape index: {}]   ;;  %s576_s2 = inlined_call_operand.vmem [shape: f32[16,4], index: 2, kind: input, shape index: {}]   ;;  %s577_s3 = inlined_call_operand.vmem [shape: f32[16,1], index: 3, kind: input, shape index: {}]   ;;  %s578_s4 = inlined_call_operand.vmem [shape: f32[2,32,8], index: 4, kind: output, shape index: {}]  }
   0x1   :  { %s530_s17 = smov 0  }
   0x2 LB: > { %s26_s18 = sadd.s32 1, %s494_s16  ;;  %p434_p0 = scmp.ge.s32.totalorder %s498_s17, 1  ;;  %s498_s17 = sphi %s530_s17, %s14_s17   ;;  %s494_s16 = sphi %s528_s16, %s580_s16   ;;  %s490_s15 = sphi %s526_s15, %s579_s15  }
   0x3   : > { %p28_p1 = scmp.ge.s32.totalorder %s26_s18, 2  ;;  %p194_p2 = scmp.lt.s32.totalorder %s498_s17, 3 }
   0x5   : > { %s582_s18 = smov (%p28_p1, %s26_s18), 0  ;;  %p195_p3 = pnand %p434_p0, %p194_p2 }
   0x6   : > { %p232_p4 = scmp.lt.s32.totalorder (!%p195_p3), %s490_s15, 1 }
   0x7   : > { %198 = sbr.rel (%p195_p3) target bundleno = 154 (0x9a), region = 36 }
   0xc   : > { %v500_v0 = vmov 0   ;;  %v256_v1 = vld [vmem:[%s577_s3] sm:$0xff]  ;;  %s584_s15 = smov (!%p232_p4, %s490_s15), 1  ;;  %vm277_vm0 = vcmask 1043456   ;;  %vm270_vm1 = vcmask 31744   ;;  %v255_v4 = vld [vmem:[%s576_s2 + $0x8] sm:$0xff] }
   0xd   : > { %475 = vset.pattern.permute.xlu0 %v500_v0  ;;  %s435_s21 = sshll.u32 %s584_s15, 2  ;;  %v254_v3 = vld [vmem:[%s576_s2] sm:$0xff]  ;;  %v257_v6 = vld [vmem:[%s577_s3 + $0x8] sm:$0xff]  ;;  %s447_s8 = sshll.u32 %s584_s15, 5  ;;  %vm304_vm2 = vcmask 64512  }
   0xe   : > { %260 = vperm.xlu0 %475, %v256_v1   ;;  %s245_s24 = scalar_lea.vmem %s575_s1, %s435_s21  ;;  %s238_s27 = scalar_lea.vmem %s574_s0, %s435_s21 }
   0xf   : > { %v268_v2 = vld [vmem:[%s245_s24] sm:$0xf]  ;;  %s253_s11 = scalar_lea.vmem %s578_s4, %s447_s8 }
  0x10   : > { %439 = vmatpush.msk.msra.mxu0 %vm277_vm0, %v268_v2  ;;  %448 = vmatpush.msk.msra.mxu2 %vm277_vm0, %v268_v2  ;;  %v269_v5 = vld [vmem:[%s238_s27] sm:$0xf] }
  0x11   : > { %442 = vmatpush.msk.msra.mxu1 %vm277_vm0, %v269_v5  ;;  %449 = vmatpush.msk.msra.mxu3 %vm277_vm0, %v269_v5 }
  0x12   : > { %440 = vmatmul.msk.f32.vlgmr.msra.gmra.mxu0 %vm270_vm1, %v254_v3  ;;  %441 = vmatmul.msk.f32.vlgmr.msra.gmra.mxu2 %vm270_vm1, %v255_v4 }
  0x13   : > { %443 = vmatmul.msk.f32.vlgmr.msra.gmra.mxu1 %vm270_vm1, %v254_v3  ;;  %444 = vmatmul.msk.f32.vlgmr.msra.gmra.mxu3 %vm270_vm1, %v255_v4 }
  0x16   : > { %265 = vperm.xlu0 %475, %v257_v6  }
  0x80   : > { %v261_v7 = vpop.permute.xlu0 %260 }
  0x88   : > { %v266_v12 = vpop.permute.xlu0 %265 }
  0x8f   : > { %v298_v8 = vpop.f32.mrf.mxu0 }
  0x90   : > { %v299_v9 = vadd.f32 %v298_v8, %v261_v7  ;;  %v327_v10 = vpop.f32.mrf.mxu1 }
  0x91   : > { %v328_v11 = vadd.f32 %v327_v10, %v261_v7 }
  0x92   : > { %305 = vst.msk [vmem:[%s253_s11] sm:$0xff] %vm304_vm2, %v299_v9 }
  0x93   : > { %333 = vst.msk [vmem:[%s253_s11 + $0x10] sm:$0xff] %vm304_vm2, %v328_v11 }
  0x95   : > { %v301_v13 = vpop.f32.mrf.mxu2 }
  0x96   : > { %v302_v14 = vadd.f32 %v301_v13, %v266_v12  ;;  %v330_v15 = vpop.f32.mrf.mxu3 }
  0x97   : > { %v331_v16 = vadd.f32 %v330_v15, %v266_v12 }
  0x98   : > { %306 = vst.msk [vmem:[%s253_s11 + $0x8] sm:$0xff] %vm304_vm2, %v302_v14 }
  0x99   : > { %334 = vst.msk [vmem:[%s253_s11 + $0x18] sm:$0xff] %vm304_vm2, %v331_v16 }
  0x9a PF: > { %s14_s17 = sadd.s32 1, %s498_s17   ;;  %s579_s15 = smov %s494_s16 }
  0x9b   : > { %p11_p5 = scmp.ge.s32.totalorder %s14_s17, 4   ;;  %s580_s16 = smov %s582_s18 }
  0x9d   :  { %13 = sbr.rel (!%p11_p5) target bundleno = 2 (0x2), region = 69 }

</bundles_post_ra>
